<compile_context>
chip_gen: v6e
topology: v6e:2x2x1
jax: 0.10.0
libtpu: 0.0.40
codegen_flags: <defaults>
</compile_context>

<pallas_src>
import jax
import jax.numpy as jnp
from jax.experimental import pallas as pl
from jax.experimental.pallas import tpu as pltpu


def _transpose2d_kernel(x_ref, o_ref):
    # x_ref: (H*W, C) = (2401, 12) resident in VMEM
    # o_ref: (C, H*W) = (12, 2401) resident in VMEM
    rows, _ = x_ref.shape
    chunk = 128
    n_full = rows // chunk          # 18 full 128-row chunks for rows = 2401

    # Chunked transpose: ~16 source vregs + 2 destination vregs live per
    # iteration; every full-chunk store is an unmasked, full-lane 128-wide vst.
    @pl.loop(0, n_full)
    def _(i):
        r = pl.multiple_of(i * chunk, chunk)
        o_ref[:, pl.ds(r, chunk)] = x_ref[pl.ds(r, chunk), :].T

    # Tail (2401 % 128 = 97 rows): one masked store; cheaper than padding the
    # array in the wrapper (which would add extra XLA ops + HBM traffic).
    tail_start = n_full * chunk
    if rows - tail_start:
        o_ref[:, tail_start:] = x_ref[tail_start:, :].T


def permute_201(x):
    H, W, C = x.shape
    x2d = x.reshape(H * W, C)  # contiguous reshape in the wrapper: free
    out2d = pl.pallas_call(
        _transpose2d_kernel,
        out_shape=jax.ShapeDtypeStruct((C, H * W), x.dtype),
        # No grid: whole array in one block (block shape == full array dims,
        # so the (8,128) divisibility rule is satisfied trivially).
        # NOTE: the (H*W, C) input block lane-pads C=12 -> 128, so the inbound
        # DMA is narrow-row.  A lane-dense input view (e.g. (49, 588)) would
        # require lane-strided (stride=12) gathers in-kernel, which cost more
        # than the DMA inefficiency for a 115 KiB op, so the simple view is
        # kept and the output side stays lane-dense instead.
        in_specs=[pl.BlockSpec((H * W, C), lambda: (0, 0),
                               memory_space=pltpu.VMEM)],
        out_specs=pl.BlockSpec((C, H * W), lambda: (0, 0),
                               memory_space=pltpu.VMEM),
        # Advisory: zero flops, pure layout change (~2 * 115 KiB HBM traffic).
        cost_estimate=pl.CostEstimate(
            flops=0,
            transcendentals=0,
            bytes_accessed=2 * H * W * C * x.dtype.itemsize,
        ),
    )(x2d)
    # Free reshape back to the PyTorch permute(2, 0, 1) output layout.
    return out2d.reshape(C, H, W)


if __name__ == "__main__":
    key = jax.random.PRNGKey(0)
    x277 = jax.random.normal(key, (49, 49, 12), dtype=jnp.float32)

    out = permute_201(x277)
    jax.block_until_ready(out)

    # Correctness check against plain JAX permute.
    ref = jnp.transpose(x277, (2, 0, 1))
    assert out.shape == (12, 49, 49), out.shape
    assert jnp.array_equal(out, ref), "mismatch vs reference permute"

    print("KERNEL_OK")
</pallas_src>

<mosaic_0001>
module attributes {stable_mosaic.version = 11 : i64} {
  func.func @_transpose2d_kernel(%arg0: memref<2401x12xf32, #tpu.memory_space<vmem>>, %arg1: memref<12x2401xf32, #tpu.memory_space<vmem>>) attributes {dimension_semantics = [], scalar_prefetch = 0 : i64, scratch_operands = 0 : i64, tpu.core_type = #tpu.core_type<tc>} {
    %c0_i32 = arith.constant 0 : i32
    %c18_i32 = arith.constant 18 : i32
    %0 = arith.addi %c0_i32, %c18_i32 : i32
    %c1_i32 = arith.constant 1 : i32
    scf.for %arg2 = %c0_i32 to %0 step %c1_i32  : i32 {
      %c1_i32_3 = arith.constant 1 : i32
      %4 = arith.muli %arg2, %c1_i32_3 : i32
      %c0_i32_4 = arith.constant 0 : i32
      %5 = arith.addi %c0_i32_4, %4 : i32
      %c128_i32 = arith.constant 128 : i32
      %6 = arith.muli %5, %c128_i32 : i32
      %7 = tpu.assume_multiple %6, 128 : i32
      %8 = arith.index_cast %7 : i32 to index
      %c0_5 = arith.constant 0 : index
      %9 = vector.load %arg0[%8, %c0_5] : memref<2401x12xf32, #tpu.memory_space<vmem>>, vector<128x12xf32>
      %10 = tpu.transpose %9, [1, 0] : vector<128x12xf32> -> vector<12x128xf32>
      %c0_6 = arith.constant 0 : index
      %11 = arith.index_cast %7 : i32 to index
      %12 = vector.load %arg1[%c0_6, %11] : memref<12x2401xf32, #tpu.memory_space<vmem>>, vector<12x128xf32>
      tpu.vector_store %arg1[%c0_6, %11], %10 {strides = array<i32>} : memref<12x2401xf32, #tpu.memory_space<vmem>>, vector<12x128xf32>,
    }
    %c18_i32_0 = arith.constant 18 : i32
    %c2304 = arith.constant 2304 : index
    %c0 = arith.constant 0 : index
    %1 = vector.load %arg0[%c2304, %c0] : memref<2401x12xf32, #tpu.memory_space<vmem>>, vector<97x12xf32>
    %2 = tpu.transpose %1, [1, 0] : vector<97x12xf32> -> vector<12x97xf32>
    %c0_1 = arith.constant 0 : index
    %c2304_2 = arith.constant 2304 : index
    %3 = vector.load %arg1[%c0_1, %c2304_2] : memref<12x2401xf32, #tpu.memory_space<vmem>>, vector<12x97xf32>
    tpu.vector_store %arg1[%c0_1, %c2304_2], %2 {strides = array<i32>} : memref<12x2401xf32, #tpu.memory_space<vmem>>, vector<12x97xf32>,
    return
  }
}

</mosaic_0001>

<bundles_post_ra>
// kernel: tpu_custom_call.1
= control target key start
LH: loop header
LB: loop body
LE: loop exit
PB: predicated region body
PF: predicated region fallthrough
CT: control target
= control target key end

     0   :  { %6 = vsyncpa [#allocation3], 0  ;;  %s202_s6 = smov 0   ;;  %s278_s0 = inlined_call_operand.vmem [shape: f32[2401,12], index: 0, kind: input, shape index: {}]   ;;  %s279_s1 = inlined_call_operand.hbm [shape: f32[12,2401], index: 1, kind: output, shape index: {}]  }
   0x1 LB: > { %s145_s7 = sshll.u32 %s187_s6, 7  ;;  %s14_s6 = sadd.s32 1, %s187_s6   ;;  %s187_s6 = sphi %s202_s6, %s14_s6  }
   0x2   : > { %s213_s10 = scalar_lea.vmem %s278_s0, %s145_s7  ;;  %s65_s11 = sshra.s32 %s145_s7, 7 }
   0x3   : > { %v17_v0 = vld [vmem:[%s213_s10] sm:$0xff]  ;;  %v18_v1 = vld [vmem:[%s213_s10 + $0x8] sm:$0xff]  ;;  %v19_v2 = vld [vmem:[%s213_s10 + $0x10] sm:$0xff]  ;;  %s146_s12 = sshll.u32 %s65_s11, 3  ;;  %p11_p0 = scmp.ge.s32.totalorder %s14_s6, 18  }
   0x4   : > { %33 = vxpose.xlu0.b32.start [1/16] (narrow) %v17_v0, 16  ;;  %v20_v3 = vld [vmem:[%s213_s10 + $0x18] sm:$0xff]  ;;  %v21_v4 = vld [vmem:[%s213_s10 + $0x20] sm:$0xff]  ;;  %v22_v5 = vld [vmem:[%s213_s10 + $0x28] sm:$0xff]  ;;  %s68_s13 = scalar_lea.vmem [#allocation2], %s146_s12  ;;  %vm116_vm0 = vcmask (%p11_p0), 793600  }
   0x5   : > { %v23_v6 = vld [vmem:[%s213_s10 + $0x30] sm:$0xff]  ;;  %v24_v7 = vld [vmem:[%s213_s10 + $0x38] sm:$0xff]  ;;  %v25_v8 = vld [vmem:[%s213_s10 + $0x40] sm:$0xff]  ;;  %s189_s11 = smov (%p11_p0), [#allocation2]   ;;  %vm118_vm1 = vcmask (%p11_p0), 789504  }
   0x6   : > { %v26_v9 = vld [vmem:[%s213_s10 + $0x48] sm:$0xff]  ;;  %v27_v10 = vld [vmem:[%s213_s10 + $0x50] sm:$0xff]  ;;  %v28_v11 = vld [vmem:[%s213_s10 + $0x58] sm:$0xff]  ;;  %s125_s12 = sshll.u32 (%p11_p0), %s189_s11, 4  ;;  %s126_s12 = int_to_ptr.vmem [resolvable:$true] %s125_s12 }
   0x7   : > { %v29_v12 = vld [vmem:[%s213_s10 + $0x60] sm:$0xff]  ;;  %v30_v13 = vld [vmem:[%s213_s10 + $0x68] sm:$0xff]  ;;  %v31_v14 = vld [vmem:[%s213_s10 + $0x70] sm:$0xff]  ;;  %p164_p2 = scmp.lt.s32.totalorder (%p11_p0), %s126_s12, %s126_s12 }
   0x8   : > { %34 = vxpose.xlu0.b32.cont [2/16] (narrow) %v18_v1, 16  ;;  %v32_v15 = vld [vmem:[%s213_s10 + $0x78] sm:$0xff]  ;;  %v71_v18 = vld [vmem:[%s278_s0 + $0x900] sm:$0xff] (%p11_p0)  ;;  %v72_v19 = vld [vmem:[%s278_s0 + $0x908] sm:$0xff] (%p11_p0) }
   0x9   :  { %v73_v20 = vld [vmem:[%s278_s0 + $0x910] sm:$0xff] (%p11_p0)  ;;  %v74_v21 = vld [vmem:[%s278_s0 + $0x918] sm:$0xff] (%p11_p0)  ;;  %v75_v22 = vld [vmem:[%s278_s0 + $0x920] sm:$0xff] (%p11_p0) }
   0xa   :  { %v76_v23 = vld [vmem:[%s278_s0 + $0x928] sm:$0xff] (%p11_p0)  ;;  %v77_v24 = vld [vmem:[%s278_s0 + $0x930] sm:$0xff] (%p11_p0)  ;;  %v78_v25 = vld [vmem:[%s278_s0 + $0x938] sm:$0xff] (%p11_p0) }
   0xb   :  { %v79_v26 = vld [vmem:[%s278_s0 + $0x940] sm:$0xff] (%p11_p0)  ;;  %v80_v27 = vld [vmem:[%s278_s0 + $0x948] sm:$0xff] (%p11_p0)  ;;  %v81_v28 = vld [vmem:[%s278_s0 + $0x950] sm:$0xff] (%p11_p0) }
   0xc   : > { %35 = vxpose.xlu0.b32.cont [3/16] (narrow) %v19_v2, 16  ;;  %v82_v29 = vld [vmem:[%s278_s0 + $0x958] sm:$0xff] (%p11_p0)  ;;  %v83_v30 = vld [vmem:[%s278_s0 + $0x960] sm:$0x1] (%p11_p0) }
  0x10   : > { %36 = vxpose.xlu0.b32.cont [4/16] (narrow) %v20_v3, 16 }
  0x14   : > { %37 = vxpose.xlu0.b32.cont [5/16] (narrow) %v21_v4, 16 }
  0x18   : > { %38 = vxpose.xlu0.b32.cont [6/16] (narrow) %v22_v5, 16 }
  0x1c   : > { %39 = vxpose.xlu0.b32.cont [7/16] (narrow) %v23_v6, 16 }
  0x20   : > { %40 = vxpose.xlu0.b32.cont [8/16] (narrow) %v24_v7, 16 }
  0x24   : > { %41 = vxpose.xlu0.b32.cont [9/16] (narrow) %v25_v8, 16 }
  0x28   : > { %42 = vxpose.xlu0.b32.cont [10/16] (narrow) %v26_v9, 16 }
  0x2c   : > { %43 = vxpose.xlu0.b32.cont [11/16] (narrow) %v27_v10, 16 }
  0x30   : > { %44 = vxpose.xlu0.b32.cont [12/16] (narrow) %v28_v11, 16 }
  0x34   : > { %45 = vxpose.xlu0.b32.cont [13/16] (narrow) %v29_v12, 16 }
  0x38   : > { %46 = vxpose.xlu0.b32.cont [14/16] (narrow) %v30_v13, 16 }
  0x3c   : > { %47 = vxpose.xlu0.b32.cont [15/16] (narrow) %v31_v14, 16 }
  0x40   : > { %48 = vxpose.xlu0.b32.end [16/16] (narrow) %v32_v15, 16 }
  0x44   :  { %84 = vxpose.xlu0.b32.start [1/13] (short) (narrow) (%p11_p0), %v71_v18, 16 }
  0x48   :  { %85 = vxpose.xlu0.b32.cont [2/13] (short) (narrow) (%p11_p0), %v72_v19, 16 }
  0x4c   :  { %86 = vxpose.xlu0.b32.cont [3/13] (short) (narrow) (%p11_p0), %v73_v20, 16 }
  0x50   :  { %87 = vxpose.xlu0.b32.cont [4/13] (short) (narrow) (%p11_p0), %v74_v21, 16 }
  0x54   :  { %88 = vxpose.xlu0.b32.cont [5/13] (short) (narrow) (%p11_p0), %v75_v22, 16 }
  0x58   :  { %89 = vxpose.xlu0.b32.cont [6/13] (short) (narrow) (%p11_p0), %v76_v23, 16 }
  0x5c   :  { %90 = vxpose.xlu0.b32.cont [7/13] (short) (narrow) (%p11_p0), %v77_v24, 16 }
  0x60   :  { %91 = vxpose.xlu0.b32.cont [8/13] (short) (narrow) (%p11_p0), %v78_v25, 16 }
  0x64   :  { %92 = vxpose.xlu0.b32.cont [9/13] (short) (narrow) (%p11_p0), %v79_v26, 16 }
  0x68   :  { %93 = vxpose.xlu0.b32.cont [10/13] (short) (narrow) (%p11_p0), %v80_v27, 16 }
  0x6c   :  { %94 = vxpose.xlu0.b32.cont [11/13] (short) (narrow) (%p11_p0), %v81_v28, 16 }
  0x70   :  { %95 = vxpose.xlu0.b32.cont [12/13] (short) (narrow) (%p11_p0), %v82_v29, 16 }
  0x74   :  { %96 = vxpose.xlu0.b32.end [13/13] (short) (narrow) (%p11_p0), %v83_v30, 16 }
  0x80   : > { %v49_v16 = vpop.trf.xlu0 }
  0x81   : > { %69 = vst [vmem:[%s68_s13] sm:$0xff] %v49_v16  ;;  %13 = sbr.rel (!%p11_p0) target bundleno = 1 (0x1), region = 33 }
  0x84   : > { %v50_v17 = vpop.trf.xlu0 }
  0x85   : > { %70 = vst [vmem:[%s68_s13 + $0x98] sm:$0xf] %v50_v17  ;;  %s159_s13 = scalar_lea.vmem (%p11_p0), %s126_s12, 4864 }
  0x86   :  { %p160_p1 = scmp.ne.s32.totalorder %s126_s12, %s159_s13  ;;  %p165_p3 = scmp.lt.s32.totalorder %s159_s13, %s159_s13 }
  0x88   :  { %p166_p4 = por %p165_p3, %p164_p2 }
  0x8a   :  { %p167_p5 = pnand %p166_p4, %p160_p1 }
  0xc0   :  { %v100_v31 = vpop.trf.xlu0 }
  0xc1   :  { %117 = vst.msk [vmem:[#allocation2 + $0x90] sm:$0xff] %vm116_vm0, %v100_v31 }
  0xc4   :  { %v101_v32 = vpop.trf.xlu0 }
  0xc5   :  { %119 = vst.msk [vmem:[#allocation2 + $0x128] sm:$0xf] %vm118_vm1, %v101_v32 }
  0xc6   :  { %170 = shalt.err (!%p167_p5)
}
  0xc7   :  { %s190_s14 = smov 2432   ;;  %s191_s15 = smov 152  }
  0xc8   :  { %131 = dma.vmem_to_hbm [thread:$0]  %s126_s12, 4864, %s279_s1, [#allocation3], %s190_s14, %s190_s14, %s191_s15  }
  0xc9   :  { %183 = dma.done.wait [#allocation3], 4864  }
  0xca   :  { %184 = vsyncadd [#allocation3], 4294962432 }
  0xcb   :  { %135 = vsyncpa [#allocation3], 1 }

</bundles_post_ra>
